<compile_context>
chip_gen: v5e
topology: v5e:2x2
jax: 0.10.0
libtpu: 0.0.40
codegen_flags: <defaults>
</compile_context>

<pallas_src>
import functools

import jax
import jax.numpy as jnp
from jax.experimental import pallas as pl
from jax.experimental.pallas import tpu as pltpu


def _classifier_kernel(x_ref, w1_ref, b1_ref, w2_ref, b2_ref, o_ref):
    # x_ref : [TB, 512] (f32 or bf16)   w1_ref : [512, 128] bf16   b1_ref : [1, 128] f32
    # w2_ref: [128, Cp] bf16            b2_ref : [1, Cp]    f32    o_ref  : [TB, Cp] f32
    x = x_ref[...]
    if x.dtype != jnp.bfloat16:
        x = x.astype(jnp.bfloat16)

    # fc1: bf16 operands, f32 accumulation (MXU); bias + ReLU in f32 (VPU).
    h = jnp.dot(x, w1_ref[...], preferred_element_type=jnp.float32)
    h = jnp.maximum(h + b1_ref[...], 0.0)

    # Dropout(0.5): identity in eval mode.

    # fc2: bf16 operands, f32 accumulation; lane-dense padded output.
    out = jnp.dot(h.astype(jnp.bfloat16), w2_ref[...],
                  preferred_element_type=jnp.float32)
    o_ref[...] = (out + b2_ref[...]).astype(o_ref.dtype)


def _round_up(n, m):
    return ((n + m - 1) // m) * m


def _choose_tile(B, tb_max):
    # Aim for >= ~4 grid steps (keeps both v7x TensorCores busy), tile rows a
    # multiple of 256, capped at tb_max (VMEM guardrail, esp. v7x 64 MiB).
    t = _round_up(pl.cdiv(B, 4), 256)
    return int(min(tb_max, max(256, t)))


def _cost_estimate(B, K, C_pad, x_itemsize):
    flops = 2 * B * (K * 128 + 128 * C_pad)
    bytes_accessed = (
        B * K * x_itemsize            # x stream
        + B * C_pad * 4               # output stream (f32)
        + K * 128 * 2 + 128 * C_pad * 2   # bf16 weights
        + 128 * 4 + C_pad * 4         # biases
    )
    return pl.CostEstimate(flops=flops, transcendentals=0,
                           bytes_accessed=bytes_accessed)


@functools.partial(jax.jit, static_argnames=("tb_max",))
def classifier_forward(x, w1, b1, w2, b2, *, tb_max=1024):
    """Inference forward of Classifier. x: [B, 512]; returns f32 logits [B, C]."""
    B, K = x.shape
    C = w2.shape[1]
    C_pad = max(128, _round_up(C, 128))

    # Pad the class dimension so fc2 / output occupy full 128-wide lane groups
    # (zero-padded weight columns & bias -> padded outputs are exact, garbage-free).
    if C_pad != C:
        w2 = jnp.pad(w2, ((0, 0), (0, C_pad - C)))
        b2 = jnp.pad(b2, ((0, 0), (0, C_pad - C)))

    # One-time bf16 weight cast (wrapper-side): halves weight VMEM/DMA and
    # removes the per-step cast inside the kernel. Biases stay f32 (epilogue).
    w1 = w1.astype(jnp.bfloat16)
    w2 = w2.astype(jnp.bfloat16)

    vmem_limit = 32 * 1024 * 1024  # > v5e's 16 MiB default; safe on v6e/v7x
    cost = _cost_estimate(B, K, C_pad, x.dtype.itemsize)

    if B <= 512:
        # Small batch: everything fits in VMEM; skip the grid entirely
        # (no pipeline prologue/epilogue for a sub-microsecond kernel).
        out = pl.pallas_call(
            _classifier_kernel,
            out_shape=jax.ShapeDtypeStruct((B, C_pad), jnp.float32),
            in_specs=[pl.BlockSpec(memory_space=pltpu.MemorySpace.VMEM)] * 5,
            out_specs=pl.BlockSpec(memory_space=pltpu.MemorySpace.VMEM),
            compiler_params=pltpu.CompilerParams(vmem_limit_bytes=vmem_limit),
            cost_estimate=cost,
        )(x, w1, b1, w2, b2)
    else:
        # Batch-tiled path: stream x/out, keep weights & biases VMEM-resident
        # via constant index_maps. No padding of x: ragged trailing block is
        # masked by Pallas (valid: each output row depends only on its own
        # input row, and out-of-bounds rows are never written back).
        tb = _choose_tile(B, tb_max)
        out = pl.pallas_call(
            _classifier_kernel,
            out_shape=jax.ShapeDtypeStruct((B, C_pad), jnp.float32),
            grid=(pl.cdiv(B, tb),),
            in_specs=[
                pl.BlockSpec((tb, K), lambda i: (i, 0)),
                pl.BlockSpec((K, 128), lambda i: (0, 0)),
                pl.BlockSpec((1, 128), lambda i: (0, 0)),
                pl.BlockSpec((128, C_pad), lambda i: (0, 0)),
                pl.BlockSpec((1, C_pad), lambda i: (0, 0)),
            ],
            out_specs=pl.BlockSpec((tb, C_pad), lambda i: (i, 0)),
            compiler_params=pltpu.CompilerParams(
                dimension_semantics=("parallel",),  # v7x: shard batch across 2 TCs
                vmem_limit_bytes=vmem_limit,
            ),
            cost_estimate=cost,
        )(x, w1, b1, w2, b2)

    # Single fused slice: drop padded class columns (and nothing else to drop
    # on the batch axis since x was never padded).
    return out[:, :C]


def init_params(key, num_classes):
    """Deterministic init mimicking nn.Linear default (uniform +/- 1/sqrt(fan_in))."""
    k1, k2, k3, k4 = jax.random.split(key, 4)
    bound1 = 1.0 / jnp.sqrt(512.0)
    bound2 = 1.0 / jnp.sqrt(128.0)
    w1 = jax.random.uniform(k1, (512, 128), jnp.float32, -bound1, bound1)
    b1 = jax.random.uniform(k2, (1, 128), jnp.float32, -bound1, bound1)
    w2 = jax.random.uniform(k3, (128, num_classes), jnp.float32, -bound2, bound2)
    b2 = jax.random.uniform(k4, (1, num_classes), jnp.float32, -bound2, bound2)
    return w1, b1, w2, b2


def reference_forward(x, w1, b1, w2, b2):
    h = jnp.maximum(x @ w1 + b1, 0.0)
    return h @ w2 + b2


if __name__ == "__main__":
    num_classes = 10  # synthetic label count (len(np.unique(labels)))

    key = jax.random.PRNGKey(0)
    kx, kp, kx2 = jax.random.split(key, 3)
    w1, b1, w2, b2 = init_params(kp, num_classes)

    # --- small batch: no-grid VMEM path ---
    batch = 8
    x = jax.random.normal(kx, (batch, 512), jnp.float32)
    out = jax.block_until_ready(classifier_forward(x, w1, b1, w2, b2))
    ref = reference_forward(x, w1, b1, w2, b2)
    assert out.shape == (batch, num_classes)
    # bf16 matmul operands (f32 accumulation) -> looser tolerance vs f32 reference.
    assert jnp.allclose(out, ref, atol=3e-2, rtol=3e-2), "small-batch mismatch vs reference"

    # --- larger batch (not a multiple of the tile): ragged batch-tiled grid path ---
    batch2 = 1000
    x2 = jax.random.normal(kx2, (batch2, 512), jnp.float32)
    out2 = jax.block_until_ready(classifier_forward(x2, w1, b1, w2, b2))
    ref2 = reference_forward(x2, w1, b1, w2, b2)
    assert out2.shape == (batch2, num_classes)
    assert jnp.allclose(out2, ref2, atol=3e-2, rtol=3e-2), "tiled-batch mismatch vs reference"

    print("KERNEL_OK")
</pallas_src>

<mosaic_0001>
module attributes {stable_mosaic.version = 11 : i64} {
  func.func @_classifier_kernel(%arg0: memref<8x512xf32, #tpu.memory_space<vmem>>, %arg1: memref<512x128xbf16, #tpu.memory_space<vmem>>, %arg2: memref<1x128xf32, #tpu.memory_space<vmem>>, %arg3: memref<128x128xbf16, #tpu.memory_space<vmem>>, %arg4: memref<1x128xf32, #tpu.memory_space<vmem>>, %arg5: memref<8x128xf32, #tpu.memory_space<vmem>>) attributes {dimension_semantics = [], scalar_prefetch = 0 : i64, scratch_operands = 0 : i64, tpu.core_type = #tpu.core_type<tc>} {
    %c0 = arith.constant 0 : index
    %c0_0 = arith.constant 0 : index
    %0 = vector.load %arg0[%c0, %c0_0] : memref<8x512xf32, #tpu.memory_space<vmem>>, vector<8x512xf32>
    %1 = arith.truncf %0 : vector<8x512xf32> to vector<8x512xbf16>
    %c0_1 = arith.constant 0 : index
    %c0_2 = arith.constant 0 : index
    %2 = vector.load %arg1[%c0_1, %c0_2] : memref<512x128xbf16, #tpu.memory_space<vmem>>, vector<512x128xbf16>
    %cst = arith.constant dense<0.000000e+00> : vector<8x128xf32>
    %3 = tpu.matmul %1, %2, %cst {dimension_numbers = #tpu.dot_dimension_numbers<[1], [0], [0], [1], [0, 0, 1, 1], [], []>} : vector<8x512xbf16>, vector<512x128xbf16>, vector<8x128xf32> -> vector<8x128xf32>
    %c0_3 = arith.constant 0 : index
    %c0_4 = arith.constant 0 : index
    %4 = vector.load %arg2[%c0_3, %c0_4] : memref<1x128xf32, #tpu.memory_space<vmem>>, vector<1x128xf32>
    %5 = vector.broadcast %4 : vector<1x128xf32> to vector<8x128xf32>
    %6 = arith.addf %3, %5 : vector<8x128xf32>
    %cst_5 = arith.constant 0.000000e+00 : f32
    %7 = vector.broadcast %cst_5 : f32 to vector<8x128xf32>
    %8 = arith.maximumf %6, %7 : vector<8x128xf32>
    %9 = arith.truncf %8 : vector<8x128xf32> to vector<8x128xbf16>
    %c0_6 = arith.constant 0 : index
    %c0_7 = arith.constant 0 : index
    %10 = vector.load %arg3[%c0_6, %c0_7] : memref<128x128xbf16, #tpu.memory_space<vmem>>, vector<128x128xbf16>
    %cst_8 = arith.constant dense<0.000000e+00> : vector<8x128xf32>
    %11 = tpu.matmul %9, %10, %cst_8 {dimension_numbers = #tpu.dot_dimension_numbers<[1], [0], [0], [1], [0, 0, 1, 1], [], []>} : vector<8x128xbf16>, vector<128x128xbf16>, vector<8x128xf32> -> vector<8x128xf32>
    %c0_9 = arith.constant 0 : index
    %c0_10 = arith.constant 0 : index
    %12 = vector.load %arg4[%c0_9, %c0_10] : memref<1x128xf32, #tpu.memory_space<vmem>>, vector<1x128xf32>
    %13 = vector.broadcast %12 : vector<1x128xf32> to vector<8x128xf32>
    %14 = arith.addf %11, %13 : vector<8x128xf32>
    %c0_11 = arith.constant 0 : index
    %c0_12 = arith.constant 0 : index
    %15 = vector.load %arg5[%c0_11, %c0_12] : memref<8x128xf32, #tpu.memory_space<vmem>>, vector<8x128xf32>
    tpu.vector_store %arg5[%c0_11, %c0_12], %14 {strides = array<i32>} : memref<8x128xf32, #tpu.memory_space<vmem>>, vector<8x128xf32>,
    return
  }
}

</mosaic_0001>

<bundles_post_ra>
// kernel: classifier_forward.1
= control target key start
LH: loop header
LB: loop body
LE: loop exit
PB: predicated region body
PF: predicated region fallthrough
CT: control target
= control target key end

     0   :  { %s842_s0 = inlined_call_operand.vmem [shape: f32[8,512], index: 0, kind: input, shape index: {}]   ;;  %s843_s1 = inlined_call_operand.vmem [shape: bf16[512,128], index: 1, kind: input, shape index: {}]   ;;  %s844_s2 = inlined_call_operand.vmem [shape: f32[1,128], index: 2, kind: input, shape index: {}]   ;;  %s845_s3 = inlined_call_operand.vmem [shape: bf16[128,128], index: 3, kind: input, shape index: {}]   ;;  %s846_s4 = inlined_call_operand.vmem [shape: f32[1,128], index: 4, kind: input, shape index: {}]   ;;  %s847_s5 = inlined_call_operand.hbm [shape: f32[8,128], index: 5, kind: output, shape index: {}]  }
   0x1   :  { %v608_v0 = vld [vmem:[%s843_s1 + $0x38] sm:$0xff]  ;;  %v607_v4 = vld [vmem:[%s843_s1 + $0x30] sm:$0xff]  ;;  %v606_v8 = vld [vmem:[%s843_s1 + $0x28] sm:$0xff] }
   0x2   :  { %v616_v1 = vld [vmem:[%s843_s1 + $0x78] sm:$0xff]  ;;  %289 = vmatpush.bf16.msra.mxu0 %v608_v0  ;;  %v615_v5 = vld [vmem:[%s843_s1 + $0x70] sm:$0xff]  ;;  %v614_v9 = vld [vmem:[%s843_s1 + $0x68] sm:$0xff] }
   0x3   :  { %v624_v2 = vld [vmem:[%s843_s1 + $0xb8] sm:$0xff]  ;;  %302 = vmatpush.bf16.msra.mxu1 %v616_v1  ;;  %v623_v6 = vld [vmem:[%s843_s1 + $0xb0] sm:$0xff]  ;;  %v622_v10 = vld [vmem:[%s843_s1 + $0xa8] sm:$0xff] }
   0x4   :  { %v632_v3 = vld [vmem:[%s843_s1 + $0xf8] sm:$0xff]  ;;  %315 = vmatpush.bf16.msra.mxu2 %v624_v2  ;;  %v631_v7 = vld [vmem:[%s843_s1 + $0xf0] sm:$0xff]  ;;  %v630_v11 = vld [vmem:[%s843_s1 + $0xe8] sm:$0xff] }
   0x5   :  { %328 = vmatpush.bf16.msra.mxu3 %v632_v3  ;;  %v605_v12 = vld [vmem:[%s843_s1 + $0x20] sm:$0xff]  ;;  %v604_v16 = vld [vmem:[%s843_s1 + $0x18] sm:$0xff] }
   0x6   :  { %290 = vmatpush.bf16.msra.mxu0 %v607_v4  ;;  %v613_v13 = vld [vmem:[%s843_s1 + $0x60] sm:$0xff]  ;;  %v612_v17 = vld [vmem:[%s843_s1 + $0x58] sm:$0xff] }
   0x7   :  { %303 = vmatpush.bf16.msra.mxu1 %v615_v5  ;;  %v621_v14 = vld [vmem:[%s843_s1 + $0xa0] sm:$0xff] }
   0x8   :  { %316 = vmatpush.bf16.msra.mxu2 %v623_v6  ;;  %v629_v15 = vld [vmem:[%s843_s1 + $0xe0] sm:$0xff] }
   0x9   :  { %329 = vmatpush.bf16.msra.mxu3 %v631_v7 }
   0xa   :  { %291 = vmatpush.bf16.msra.mxu0 %v606_v8 }
   0xb   :  { %304 = vmatpush.bf16.msra.mxu1 %v614_v9 }
   0xc   :  { %317 = vmatpush.bf16.msra.mxu2 %v622_v10 }
   0xd   :  { %330 = vmatpush.bf16.msra.mxu3 %v630_v11 }
   0xe   :  { %292 = vmatpush.bf16.msra.mxu0 %v605_v12 }
   0xf   :  { %305 = vmatpush.bf16.msra.mxu1 %v613_v13 }
  0x10   :  { %10 = vsyncpa [#allocation3], 0  ;;  %318 = vmatpush.bf16.msra.mxu2 %v621_v14  ;;  %v620_v18 = vld [vmem:[%s843_s1 + $0x98] sm:$0xff]  ;;  %v603_v20 = vld [vmem:[%s843_s1 + $0x10] sm:$0xff]  ;;  %s432_s10 = sshll.u32 %s847_s5, 4  ;;  %s433_s10 = int_to_ptr.hbm [resolvable:$true] %s432_s10 }
  0x11   :  { %331 = vmatpush.bf16.msra.mxu3 %v629_v15  ;;  %v628_v19 = vld [vmem:[%s843_s1 + $0xd8] sm:$0xff]  ;;  %v611_v21 = vld [vmem:[%s843_s1 + $0x50] sm:$0xff]  ;;  %v602_v24 = vld [vmem:[%s843_s1 + $0x8] sm:$0xff] }
  0x12   :  { %293 = vmatpush.bf16.msra.mxu0 %v604_v16  ;;  %v619_v22 = vld [vmem:[%s843_s1 + $0x90] sm:$0xff]  ;;  %v610_v25 = vld [vmem:[%s843_s1 + $0x48] sm:$0xff]  ;;  %v601_v28 = vld [vmem:[%s843_s1] sm:$0xff] }
  0x13   :  { %306 = vmatpush.bf16.msra.mxu1 %v612_v17  ;;  %v627_v23 = vld [vmem:[%s843_s1 + $0xd0] sm:$0xff]  ;;  %v618_v26 = vld [vmem:[%s843_s1 + $0x88] sm:$0xff]  ;;  %v609_v29 = vld [vmem:[%s843_s1 + $0x40] sm:$0xff] }
  0x14   :  { %319 = vmatpush.bf16.msra.mxu2 %v620_v18  ;;  %v626_v27 = vld [vmem:[%s843_s1 + $0xc8] sm:$0xff]  ;;  %v617_v30 = vld [vmem:[%s843_s1 + $0x80] sm:$0xff]  ;;  %v23_v34 = vld [vmem:[%s842_s0 + $0x10] sm:$0xff] }
  0x15   :  { %332 = vmatpush.bf16.msra.mxu3 %v628_v19  ;;  %v21_v31 = vld [vmem:[%s842_s0] sm:$0xff]  ;;  %v22_v32 = vld [vmem:[%s842_s0 + $0x8] sm:$0xff]  ;;  %v24_v35 = vld [vmem:[%s842_s0 + $0x18] sm:$0xff]  ;;  %v27_v39 = vpack.c.bf16 %v23_v34, %v23_v34 }
  0x16   :  { %294 = vmatpush.bf16.msra.mxu0 %v603_v20  ;;  %v625_v33 = vld [vmem:[%s843_s1 + $0xc0] sm:$0xff]  ;;  %v640_v36 = vld [vmem:[%s845_s3 + $0x38] sm:$0xff]  ;;  %v25_v37 = vpack.c.bf16 %v21_v31, %v21_v31  ;;  %v26_v38 = vpack.c.bf16 %v22_v32, %v22_v32  ;;  %v28_v40 = vpack.c.bf16 %v24_v35, %v24_v35  ;;  %v639_v41 = vld [vmem:[%s845_s3 + $0x30] sm:$0xff] }
  0x17   :  { %307 = vmatpush.bf16.msra.mxu1 %v611_v21  ;;  %v638_v42 = vld [vmem:[%s845_s3 + $0x28] sm:$0xff]  ;;  %v637_v43 = vld [vmem:[%s845_s3 + $0x20] sm:$0xff]  ;;  %v636_v44 = vld [vmem:[%s845_s3 + $0x18] sm:$0xff] }
  0x18   :  { %320 = vmatpush.bf16.msra.mxu2 %v619_v22  ;;  %v635_v45 = vld [vmem:[%s845_s3 + $0x10] sm:$0xff]  ;;  %v634_v46 = vld [vmem:[%s845_s3 + $0x8] sm:$0xff]  ;;  %v633_v47 = vld [vmem:[%s845_s3] sm:$0xff] }
  0x19   :  { %333 = vmatpush.bf16.msra.mxu3 %v627_v23  ;;  %v642_v48 = vld [vmem:[%s844_s2] ss:$0 sm:$0xff]  ;;  %s670_s2 = smov [#allocation2]  }
  0x1a   :  { %295 = vmatpush.bf16.msra.mxu0 %v602_v24  ;;  %v643_v63 = vld [vmem:[%s846_s4] ss:$0 sm:$0xff]  ;;  %s430_s7 = sshll.u32 %s670_s2, 4  ;;  %s431_s7 = int_to_ptr.vmem [resolvable:$true] %s430_s7 }
  0x1b   :  { %308 = vmatpush.bf16.msra.mxu1 %v610_v25 }
  0x1c   :  { %321 = vmatpush.bf16.msra.mxu2 %v618_v26 }
  0x1d   :  { %334 = vmatpush.bf16.msra.mxu3 %v626_v27 }
  0x1e   :  { %296 = vmatpush.bf16.msra.mxu0 %v601_v28 }
  0x1f   :  { %309 = vmatpush.bf16.msra.mxu1 %v609_v29 }
  0x20   :  { %322 = vmatpush.bf16.msra.mxu2 %v617_v30 }
  0x21   :  { %335 = vmatpush.bf16.msra.mxu3 %v625_v33  ;;  %297 = vmatmul.bf16.vlgmr.msra.gmra.mxu0 %v25_v37 }
  0x22   :  { %411 = vmatpush.bf16.msrb.mxu0 %v640_v36  ;;  %310 = vmatmul.bf16.vlgmr.msra.gmra.mxu1 %v26_v38 }
  0x23   :  { %323 = vmatmul.bf16.vlgmr.msra.gmra.mxu2 %v27_v39 }
  0x24   :  { %336 = vmatmul.bf16.vlgmr.msra.gmra.mxu3 %v28_v40 }
  0x26   :  { %412 = vmatpush.bf16.msrb.mxu0 %v639_v41 }
  0x2a   :  { %413 = vmatpush.bf16.msrb.mxu0 %v638_v42 }
  0x2e   :  { %414 = vmatpush.bf16.msrb.mxu0 %v637_v43 }
  0x32   :  { %415 = vmatpush.bf16.msrb.mxu0 %v636_v44 }
  0x36   :  { %416 = vmatpush.bf16.msrb.mxu0 %v635_v45 }
  0x3a   :  { %417 = vmatpush.bf16.msrb.mxu0 %v634_v46 }
  0x3e   :  { %418 = vmatpush.bf16.msrb.mxu0 %v633_v47 }
  0x9e   :  { %v298_v49 = vpop.f32.mrf.mxu0 }
  0x9f   :  { %v311_v50 = vpop.f32.mrf.mxu1  ;;  %v299_v51 = vadd.f32 %v642_v48, %v298_v49 }
  0xa1   :  { %v312_v52 = vadd.f32 %v311_v50, %v299_v51 }
  0xa6   :  { %v324_v53 = vpop.f32.mrf.mxu2  ;;  %v300_v56 = vpop.f32.mrf.mxu0 }
  0xa7   :  { %v337_v54 = vpop.f32.mrf.mxu3  ;;  %v325_v55 = vadd.f32 %v324_v53, %v312_v52  ;;  %v313_v57 = vpop.f32.mrf.mxu1 }
  0xa9   :  { %v338_v58 = vadd.f32 %v337_v54, %v325_v55 }
  0xab   :  { %v341_v59 = vmax.f32 %v338_v58, 0.0 }
  0xad   :  { %v342_v60 = vpack.c.bf16 %v341_v59, %v341_v59 }
  0xae   :  { %v326_v61 = vpop.f32.mrf.mxu2 }
  0xaf   :  { %v339_v62 = vpop.f32.mrf.mxu3  ;;  %419 = vmatmul.bf16.vlgmr.msrb.gmra.mxu0 %v342_v60 }
 0x12c   :  { %v420_v0 = vpop.f32.mrf.mxu0 }
 0x12d   :  { %v421_v1 = vadd.f32 %v643_v63, %v420_v0 }
 0x12f   :  { %424 = vst [vmem:[#allocation2] sm:$0xff] %v421_v1 }
 0x130   :  { %435 = dma.vmem_to_hbm [thread:$0]  %s431_s7, 128, %s433_s10, [#allocation3]  }
 0x134   :  { %v422_v2 = vpop.f32.mrf.mxu0 }
 0x135   :  { %668 = dma.done.wait [#allocation3], 128  }
 0x136   :  { %669 = vsyncadd [#allocation3], 4294967168 }
 0x137   :  { %440 = vsyncpa [#allocation3], 1 }

</bundles_post_ra>
